<compile_context>
chip_gen: v5e
topology: v5e:2x2
jax: 0.10.0
libtpu: 0.0.40
codegen_flags: <defaults>
</compile_context>

<pallas_src>
import jax
import jax.numpy as jnp
from jax.experimental import pallas as pl
from jax.experimental.pallas import tpu as pltpu


def _sigmoid_kernel(x_ref, o_ref):
    # Upcast to f32 (free, hidden under DMA) and use the single-transcendental
    # form: sigmoid(x) == 0.5 * tanh(0.5 * x) + 0.5  (one EUP op + two VPU ops).
    x = x_ref[...].astype(jnp.float32)
    out = 0.5 * jnp.tanh(0.5 * x) + 0.5
    o_ref[...] = out.astype(o_ref.dtype)


def sigmoid_pallas(x, *, target_block_bytes=8 << 20):
    """Elementwise sigmoid 1 / (1 + exp(-x)) for any shape / float dtype."""
    orig_shape = x.shape
    orig_dtype = x.dtype
    n = x.size
    if n == 0:
        return x

    itemsize = jnp.dtype(orig_dtype).itemsize
    # Native packed-sublane tile: 8 rows for 4-byte, 16 for 2-byte, 32 for 1-byte.
    sublane = max(8, 32 // itemsize)

    x_flat = jnp.ravel(x)  # free for a contiguous array

    # Split off a <128-element ragged tail so the main slab needs no padding.
    n_main = (n // 128) * 128
    tail = x_flat[n_main:] if n_main != n else None
    if tail is not None:
        x_flat = x_flat[:n_main]

    out_parts = []
    if n_main > 0:
        # Widest lane (last) dim <= 4096 that divides the main size exactly.
        lanes = 128
        for cand in (4096, 2048, 1024, 512, 256):
            if n_main % cand == 0:
                lanes = cand
                break
        rows = n_main // lanes
        x2d = x_flat.reshape(rows, lanes)

        # Rows per block for ~target_block_bytes, rounded to the sublane tile.
        rows_per_block = max(sublane, target_block_bytes // (lanes * itemsize))
        rows_per_block = int(rows_per_block) - int(rows_per_block) % sublane
        tile_rows = min(rows, rows_per_block)  # block == full dim is always legal
        if tile_rows != rows and tile_rows % sublane:
            tile_rows -= tile_rows % sublane

        # Keep >= 2 grid steps (when the slab allows) so both v7x TensorCores
        # get work under "parallel"; irrelevant on 1-TC v5e/v6e, harmless there.
        if rows >= 2 * sublane and pl.cdiv(rows, tile_rows) < 2:
            half = -(-rows // 2)
            half = -(-half // sublane) * sublane
            tile_rows = min(tile_rows, half)

        grid = (pl.cdiv(rows, tile_rows),)  # ragged last block handled by Pallas

        out2d = pl.pallas_call(
            _sigmoid_kernel,
            out_shape=jax.ShapeDtypeStruct((rows, lanes), orig_dtype),
            grid_spec=pltpu.PrefetchScalarGridSpec(
                num_scalar_prefetch=0,
                grid=grid,
                in_specs=[pl.BlockSpec((tile_rows, lanes), lambda i: (i, 0))],
                out_specs=pl.BlockSpec((tile_rows, lanes), lambda i: (i, 0)),
            ),
            compiler_params=pltpu.CompilerParams(
                dimension_semantics=("parallel",),   # shard 1-D grid across TCs
                vmem_limit_bytes=48 << 20,           # 8 MiB block x 4 buffers = 32 MiB
            ),
            cost_estimate=pl.CostEstimate(
                flops=3 * n_main,
                transcendentals=n_main,
                bytes_accessed=2 * n_main * itemsize,
            ),
        )(x2d)
        out_parts.append(out2d.reshape(-1))

    if tail is not None:
        # <128 elements: not worth an HBM pad/slice pass or its own kernel.
        out_parts.append(jax.nn.sigmoid(tail).astype(orig_dtype))

    out_flat = out_parts[0] if len(out_parts) == 1 else jnp.concatenate(out_parts)
    return out_flat.reshape(orig_shape)


if __name__ == "__main__":
    key = jax.random.PRNGKey(0)

    # Small NCHW input consistent with the conv-oriented project: (N, C, H, W).
    x = jax.random.normal(key, (2, 4, 16, 16), dtype=jnp.float32)
    out = jax.block_until_ready(sigmoid_pallas(x))
    ref = 1.0 / (1.0 + jnp.exp(-x))
    assert out.shape == x.shape and out.dtype == x.dtype
    assert jnp.max(jnp.abs(out - ref)) < 1e-6

    # Ragged (flat size not a multiple of 128) path: prefix kernel + tiny tail.
    key2 = jax.random.PRNGKey(1)
    y = jax.random.normal(key2, (2, 3, 43), dtype=jnp.float32)  # 258 elements
    out_y = jax.block_until_ready(sigmoid_pallas(y))
    ref_y = 1.0 / (1.0 + jnp.exp(-y))
    assert out_y.shape == y.shape and out_y.dtype == y.dtype
    assert jnp.max(jnp.abs(out_y - ref_y)) < 1e-6

    print("KERNEL_OK")
</pallas_src>

<mosaic_0001>
module attributes {stable_mosaic.version = 11 : i64} {
  func.func @_sigmoid_kernel(%arg0: i32, %arg1: memref<1x2048xf32, #tpu.memory_space<vmem>>, %arg2: memref<1x2048xf32, #tpu.memory_space<vmem>>) attributes {dimension_semantics = [#tpu.dimension_semantics<parallel>], iteration_bounds = array<i64: 1>, scalar_prefetch = 0 : i64, scratch_operands = 0 : i64, tpu.core_type = #tpu.core_type<tc>, window_params = [{transform_indices = @transform_0, window_bounds = array<i64: 1, 2048>}, {transform_indices = @transform_1, window_bounds = array<i64: 1, 2048>}]} {
    %c0 = arith.constant 0 : index
    %c0_0 = arith.constant 0 : index
    %0 = vector.load %arg1[%c0, %c0_0] : memref<1x2048xf32, #tpu.memory_space<vmem>>, vector<1x2048xf32>
    %cst = arith.constant 5.000000e-01 : f32
    %1 = vector.broadcast %cst : f32 to vector<1x2048xf32>
    %2 = arith.mulf %1, %0 : vector<1x2048xf32>
    %3 = math.tanh %2 : vector<1x2048xf32>
    %cst_1 = arith.constant 5.000000e-01 : f32
    %4 = vector.broadcast %cst_1 : f32 to vector<1x2048xf32>
    %5 = arith.mulf %4, %3 : vector<1x2048xf32>
    %cst_2 = arith.constant 5.000000e-01 : f32
    %6 = vector.broadcast %cst_2 : f32 to vector<1x2048xf32>
    %7 = arith.addf %5, %6 : vector<1x2048xf32>
    %c0_3 = arith.constant 0 : index
    %c0_4 = arith.constant 0 : index
    %8 = vector.load %arg2[%c0_3, %c0_4] : memref<1x2048xf32, #tpu.memory_space<vmem>>, vector<1x2048xf32>
    tpu.vector_store %arg2[%c0_3, %c0_4], %7 {strides = array<i32>} : memref<1x2048xf32, #tpu.memory_space<vmem>>, vector<1x2048xf32>,
    return
  }
  func.func @transform_0(%arg0: i32) -> (i32, i32) {
    %c0_i32 = arith.constant 0 : i32
    %c0_i32_0 = arith.constant 0 : i32
    return %arg0, %c0_i32 : i32, i32
  }
  func.func @transform_1(%arg0: i32) -> (i32, i32) {
    %c0_i32 = arith.constant 0 : i32
    %c0_i32_0 = arith.constant 0 : i32
    return %arg0, %c0_i32 : i32, i32
  }
}

</mosaic_0001>

<bundles_post_ra>
// kernel: tpu_custom_call.1
= control target key start
LH: loop header
LB: loop body
LE: loop exit
PB: predicated region body
PF: predicated region fallthrough
CT: control target
= control target key end

     0   :  { %6 = vsyncpa [#allocation3], 0  ;;  %s128_s0 = inlined_call_operand.hbm [shape: f32[1,2048], index: 0, kind: input, shape index: {}]   ;;  %s129_s1 = inlined_call_operand.hbm [shape: f32[1,2048], index: 1, kind: output, shape index: {}]  }
   0x1   :  { %7 = vsyncpa [#allocation4], 0  ;;  %s13_s8 = sshll.u32 %s128_s0, 4  ;;  %s110_s9 = smov [#allocation2]   ;;  %s14_s8 = int_to_ptr.hbm [resolvable:$true] %s13_s8 }
   0x2   :  { %s15_s10 = sshll.u32 %s110_s9, 4  ;;  %s16_s10 = int_to_ptr.vmem [resolvable:$true] %s15_s10 }
   0x3   :  { %18 = dma.hbm_to_vmem [thread:$0]  %s14_s8, 256, %s16_s10, [#allocation3]  }
   0x4   :  { %106 = dma.done.wait [#allocation3], 256  }
   0x5   :  { %107 = vsyncadd [#allocation3], 4294967040  ;;  %v23_v0 = vld [vmem:[#allocation2] sm:$0xff]  ;;  %v24_v1 = vld [vmem:[#allocation2 + $0x8] sm:$0xff]  ;;  %s111_s11 = smov [#allocation5]   ;;  %s42_s14 = sshll.u32 %s129_s1, 4  ;;  %s43_s14 = int_to_ptr.hbm [resolvable:$true] %s42_s14 }
   0x6   :  { %v25_v2 = vmul.f32 0.5, %v23_v0  ;;  %v26_v3 = vmul.f32 0.5, %v24_v1  ;;  %s40_s12 = sshll.u32 %s111_s11, 4  ;;  %s41_s12 = int_to_ptr.vmem [resolvable:$true] %s40_s12 }
   0x8   :  { %54 = vtanh.f32 %v25_v2 }
   0x9   :  { %56 = vtanh.f32 %v26_v3 }
   0xe   :  { %v55_v4 = vpop.eup %54 }
   0xf   :  { %v57_v5 = vpop.eup %56  ;;  %v29_v6 = vmul.f32 0.5, %v55_v4 }
  0x10   :  { %v30_v7 = vmul.f32 0.5, %v57_v5 }
  0x11   :  { %v31_v8 = vadd.f32 0.5, %v29_v6 }
  0x12   :  { %v32_v9 = vadd.f32 0.5, %v30_v7 }
  0x13   :  { %33 = vst [vmem:[#allocation5] sm:$0xff] %v31_v8 }
  0x14   :  { %34 = vst [vmem:[#allocation5 + $0x8] sm:$0xff] %v32_v9 }
  0x15   :  { %45 = dma.vmem_to_hbm [thread:$0]  %s41_s12, 256, %s43_s14, [#allocation4]  }
  0x16   :  { %108 = dma.done.wait [#allocation4], 256  }
  0x17   :  { %109 = vsyncadd [#allocation4], 4294967040 }
  0x18   :  { %50 = vsyncpa [#allocation3], 1 }
  0x19   :  { %51 = vsyncpa [#allocation4], 1 }

</bundles_post_ra>
